<compile_context>
chip_gen: v7x
topology: tpu7x:2x2x1
jax: 0.10.0
libtpu: 0.0.40
codegen_flags: <defaults>
</compile_context>

<pallas_src>
import functools

import jax
import jax.numpy as jnp
from jax.experimental import pallas as pl
from jax.experimental.pallas import tpu as pltpu


# ---------------------------------------------------------------------------
# Stage 1: XW = X @ W  (hoisted out of the aggregation grid)
# ---------------------------------------------------------------------------
def xw_kernel(x_ref, w_ref, xw_ref):
    xw_ref[...] = jnp.dot(
        x_ref[...], w_ref[...], preferred_element_type=jnp.float32
    ).astype(xw_ref.dtype)


def _xw_matmul(x_bf, w_bf):
    n_pad, fin = x_bf.shape
    fout = w_bf.shape[1]
    tr = _row_tile(n_pad)
    return pl.pallas_call(
        xw_kernel,
        out_shape=jax.ShapeDtypeStruct((n_pad, fout), jnp.bfloat16),
        grid_spec=pltpu.PrefetchScalarGridSpec(
            num_scalar_prefetch=0,
            grid=(n_pad // tr,),
            in_specs=[
                pl.BlockSpec((tr, fin), lambda i: (i, 0)),
                pl.BlockSpec((fin, fout), lambda i: (0, 0)),   # weights resident
            ],
            out_specs=pl.BlockSpec((tr, fout), lambda i: (i, 0)),
        ),
        compiler_params=pltpu.CompilerParams(
            dimension_semantics=("parallel",),
        ),
    )(x_bf, w_bf)


# ---------------------------------------------------------------------------
# Stage 2: out = A @ XW + b  (optionally fused ReLU)
# ---------------------------------------------------------------------------
def gcn_agg_kernel(adj_ref, xw_ref, b_ref, out_ref, acc_ref, *,
                   apply_relu, xw_resident, tk):
    k = pl.program_id(1)

    @pl.when(k == 0)
    def _init():
        # Fold the bias into the accumulator init (no separate bias-add pass).
        acc_ref[...] = jnp.broadcast_to(b_ref[...], acc_ref.shape)

    if xw_resident:
        start = pl.multiple_of(k * tk, tk)
        xw = xw_ref[pl.ds(start, tk), :]          # slice the resident XW
    else:
        xw = xw_ref[...]                          # streamed (tk, fout) tile

    # int8 adjacency (HBM-bandwidth lever) -> bf16 on the VPU, f32 MXU accum.
    adj = adj_ref[...].astype(xw.dtype)
    acc_ref[...] += jnp.dot(adj, xw, preferred_element_type=jnp.float32)

    @pl.when(k == pl.num_programs(1) - 1)
    def _finalize():
        res = acc_ref[...]
        if apply_relu:  # static Python flag, resolved at trace time
            res = jnp.maximum(res, 0.0)
        out_ref[...] = res.astype(out_ref.dtype)


# ---------------------------------------------------------------------------
# Tiling / padding helpers
# ---------------------------------------------------------------------------
def _round_up(v, m):
    return ((v + m - 1) // m) * m


def _pad_axis(a, target, axis):
    pad = target - a.shape[axis]
    if pad == 0:
        return a
    widths = [(0, 0)] * a.ndim
    widths[axis] = (0, pad)
    return jnp.pad(a, widths)


def _row_tile(n_pad):
    """Row (dst) tile: as big as possible while keeping >=2 row tiles when we
    can, so the 'parallel' axis still shards across both v7x TensorCores."""
    for t in (1024, 512, 256, 128):
        if n_pad % t == 0 and n_pad // t >= 2:
            return t
    return 128


def _col_tile(n_pad):
    """Reduction (src) tile: largest 128-multiple divisor up to 2048 (bigger
    contiguous adjacency DMAs, fewer ~0.35us grid-step overheads)."""
    for t in (2048, 1024, 512, 256, 128):
        if n_pad % t == 0:
            return t
    return 128


def _prep_adjacency(adj, n_pad):
    # Edge multiplicities must be small non-negative integers (<= 127) so the
    # int8 copy streamed from HBM is exact; this halves adjacency HBM traffic.
    adj_i8 = adj.astype(jnp.int8)
    return _pad_axis(_pad_axis(adj_i8, n_pad, 0), n_pad, 1)


# ---------------------------------------------------------------------------
# Layer / model wrappers
# ---------------------------------------------------------------------------
def _gcn_layer_padded(adj_i8, x_bf, w, b, *, apply_relu):
    """One GCNLayer on already-padded operands. Returns padded f32 output."""
    n_pad = adj_i8.shape[0]
    fout = w.shape[1]

    w_bf = w.astype(jnp.bfloat16)
    b_f32 = b.astype(jnp.float32).reshape(1, fout)

    xw = _xw_matmul(x_bf, w_bf)                   # (n_pad, fout) bf16, computed once

    tm = _row_tile(n_pad)
    tk = _col_tile(n_pad)

    # Keep XW fully VMEM-resident when it is small (removes a per-step DMA).
    xw_resident = n_pad * fout * 2 <= 4 * 1024 * 1024
    if xw_resident:
        xw_spec = pl.BlockSpec((n_pad, fout), lambda i, k: (0, 0))
    else:
        xw_spec = pl.BlockSpec((tk, fout), lambda i, k: (k, 0))

    kernel = functools.partial(
        gcn_agg_kernel, apply_relu=apply_relu, xw_resident=xw_resident, tk=tk
    )

    return pl.pallas_call(
        kernel,
        out_shape=jax.ShapeDtypeStruct((n_pad, fout), jnp.float32),
        grid_spec=pltpu.PrefetchScalarGridSpec(
            num_scalar_prefetch=0,
            grid=(n_pad // tm, n_pad // tk),                 # (dst rows, src cols)
            in_specs=[
                pl.BlockSpec((tm, tk), lambda i, k: (i, k)),  # int8 adjacency tile
                xw_spec,                                      # XW (resident or tiled)
                pl.BlockSpec((1, fout), lambda i, k: (0, 0)), # bias (resident)
            ],
            out_specs=pl.BlockSpec((tm, fout), lambda i, k: (i, 0)),
            scratch_shapes=[pltpu.VMEM((tm, fout), jnp.float32)],
        ),
        compiler_params=pltpu.CompilerParams(
            dimension_semantics=("parallel", "arbitrary"),
            vmem_limit_bytes=32 * 1024 * 1024,
        ),
    )(adj_i8, xw, b_f32)


def gcn_layer_forward(adj, x, w, b, *, apply_relu=False):
    """One GCNLayer: out = (A @ x) @ W + b  (ReLU optionally fused)."""
    n = x.shape[0]
    n_pad = _round_up(max(n, 1), 128)
    adj_p = _prep_adjacency(adj, n_pad)
    x_p = _pad_axis(x.astype(jnp.bfloat16), n_pad, 0)
    out = _gcn_layer_padded(adj_p, x_p, w, b, apply_relu=apply_relu)
    return out[:n]


def gcn2_forward(adj, x, w1, b1, w2, b2):
    """2-layer GCN (relu(GCNLayer) -> GCNLayer); pads once, slices once."""
    n = x.shape[0]
    n_pad = _round_up(max(n, 1), 128)
    adj_p = _prep_adjacency(adj, n_pad)           # int8, padded, shared by both layers
    x_p = _pad_axis(x.astype(jnp.bfloat16), n_pad, 0)
    h1 = _gcn_layer_padded(adj_p, x_p, w1, b1, apply_relu=True)
    out = _gcn_layer_padded(adj_p, h1.astype(jnp.bfloat16), w2, b2, apply_relu=False)
    return out[:n]


# ---------------------------------------------------------------------------
# Demo / self-test
# ---------------------------------------------------------------------------
def _linear_params(key, in_feats, out_feats):
    """Deterministic nn.Linear-style init, stored as [in, out] so y = x @ W."""
    kw, kb = jax.random.split(key)
    bound = 1.0 / jnp.sqrt(jnp.float32(in_feats))
    w = jax.random.uniform(kw, (in_feats, out_feats), jnp.float32, -bound, bound)
    b = jax.random.uniform(kb, (1, out_feats), jnp.float32, -bound, bound)
    return w, b


def _ring_adjacency(n):
    """Ring (i -> i+1) plus self-loops as dense A[dst, src] multiplicities."""
    src = jnp.arange(n, dtype=jnp.int32)
    dst = (src + 1) % n
    adj = jnp.zeros((n, n), jnp.float32)
    adj = adj.at[dst, src].add(1.0)   # ring edges
    adj = adj.at[src, src].add(1.0)   # self-loops (every node receives a message)
    return adj


if __name__ == "__main__":
    IN_FEATS = 16
    HIDDEN = 8
    NUM_CLASSES = 4

    key = jax.random.PRNGKey(0)
    k1, k2, kx_small, kx_big = jax.random.split(key, 4)
    w1, b1 = _linear_params(k1, IN_FEATS, HIDDEN)
    w2, b2 = _linear_params(k2, HIDDEN, NUM_CLASSES)

    # Small graph (padded single-block path) and a larger one that exercises
    # the tiled (row-parallel x source-reduction) grid.
    for n, kx in ((8, kx_small), (1024, kx_big)):
        x = jax.random.normal(kx, (n, IN_FEATS), jnp.float32)
        adj = _ring_adjacency(n)
        # int8 adjacency stream must be exact: multiplicities <= 127.
        assert float(adj.max()) <= 127.0

        out = gcn2_forward(adj, x, w1, b1, w2, b2)
        jax.block_until_ready(out)

        # Pure-JAX f32 reference (kernel uses bf16 features + f32 accumulation,
        # so ~1e-2-level differences are the intended numeric contract).
        ref_h1 = jnp.maximum((adj @ x) @ w1 + b1, 0.0)
        ref = (adj @ ref_h1) @ w2 + b2
        assert out.shape == (n, NUM_CLASSES)
        assert jnp.allclose(out, ref, atol=2e-1, rtol=1e-1), float(
            jnp.max(jnp.abs(out - ref))
        )

    print("KERNEL_OK")
</pallas_src>

<mosaic_0001>
module attributes {stable_mosaic.version = 11 : i64} {
  func.func @xw_kernel(%arg0: i32, %arg1: memref<128x16xbf16, #tpu.memory_space<vmem>>, %arg2: memref<16x8xbf16, #tpu.memory_space<vmem>>, %arg3: memref<128x8xbf16, #tpu.memory_space<vmem>>) attributes {dimension_semantics = [#tpu.dimension_semantics<parallel>], iteration_bounds = array<i64: 1>, scalar_prefetch = 0 : i64, scratch_operands = 0 : i64, tpu.core_type = #tpu.core_type<tc>, window_params = [{transform_indices = @transform_0, window_bounds = array<i64: 128, 16>}, {pipeline_mode = #tpu.pipeline_mode<synchronous>, transform_indices = @transform_1, window_bounds = array<i64: 16, 8>}, {transform_indices = @transform_2, window_bounds = array<i64: 128, 8>}]} {
    %c0 = arith.constant 0 : index
    %c0_0 = arith.constant 0 : index
    %0 = vector.load %arg1[%c0, %c0_0] : memref<128x16xbf16, #tpu.memory_space<vmem>>, vector<128x16xbf16>
    %c0_1 = arith.constant 0 : index
    %c0_2 = arith.constant 0 : index
    %1 = vector.load %arg2[%c0_1, %c0_2] : memref<16x8xbf16, #tpu.memory_space<vmem>>, vector<16x8xbf16>
    %cst = arith.constant dense<0.000000e+00> : vector<128x8xf32>
    %2 = tpu.matmul %0, %1, %cst {dimension_numbers = #tpu.dot_dimension_numbers<[1], [0], [0], [1], [0, 0, 1, 1], [], []>} : vector<128x16xbf16>, vector<16x8xbf16>, vector<128x8xf32> -> vector<128x8xf32>
    %3 = arith.truncf %2 : vector<128x8xf32> to vector<128x8xbf16>
    %c0_3 = arith.constant 0 : index
    %c0_4 = arith.constant 0 : index
    %4 = vector.load %arg3[%c0_3, %c0_4] : memref<128x8xbf16, #tpu.memory_space<vmem>>, vector<128x8xbf16>
    tpu.vector_store %arg3[%c0_3, %c0_4], %3 {strides = array<i32>} : memref<128x8xbf16, #tpu.memory_space<vmem>>, vector<128x8xbf16>,
    return
  }
  func.func @transform_0(%arg0: i32) -> (i32, i32) {
    %c0_i32 = arith.constant 0 : i32
    %c0_i32_0 = arith.constant 0 : i32
    return %arg0, %c0_i32 : i32, i32
  }
  func.func @transform_1(%arg0: i32) -> (i32, i32) {
    %c0_i32 = arith.constant 0 : i32
    %c0_i32_0 = arith.constant 0 : i32
    %c0_i32_1 = arith.constant 0 : i32
    return %c0_i32, %c0_i32_0 : i32, i32
  }
  func.func @transform_2(%arg0: i32) -> (i32, i32) {
    %c0_i32 = arith.constant 0 : i32
    %c0_i32_0 = arith.constant 0 : i32
    return %arg0, %c0_i32 : i32, i32
  }
}

</mosaic_0001>

<bundles_post_ra>
// kernel: tpu_custom_call.1
= control target key start
LH: loop header
LB: loop body
LE: loop exit
PB: predicated region body
PF: predicated region fallthrough
CT: control target
= control target key end

     0   :  { %vm76_vm0 = vcmask 130048   ;;  %vm262_vm1 = vcmask 60416   ;;  %s484_s1 = inlined_call_operand.vmem [shape: bf16[16,8], index: 1, kind: input, shape index: {}]   ;;  %s485_s0 = inlined_call_operand.vmem [shape: bf16[128,16], index: 0, kind: input, shape index: {}]   ;;  %s486_s2 = inlined_call_operand.vmem [shape: bf16[128,8], index: 2, kind: output, shape index: {}]  }
   0x1   :  { %v361_v0 = vld [vmem:[%s484_s1] sm:$0xff]   ;;  %v364_v3 = vld [vmem:[%s485_s0 + $0x8] sm:$0xff]   ;;  %v366_v5 = vld [vmem:[%s485_s0 + $0x10] sm:$0xff]  }
   0x2   :  { %v362_v1 = vld [vmem:[%s485_s0] sm:$0xff]   ;;  %341 = vmatprep.subr.bf16.mxu0 %v361_v0  ;;  %359 = vmatprep.subr.bf16.mxu1 %v361_v0  ;;  %v365_v4 = vld [vmem:[%s485_s0 + $0x28] sm:$0xff]   ;;  %v367_v6 = vld [vmem:[%s485_s0 + $0x30] sm:$0xff]  }
   0x3   :  { %v363_v2 = vld [vmem:[%s485_s0 + $0x20] sm:$0xff]   ;;  %342 = vmatpush3.bf16.msra.mxu0 %v361_v0  ;;  %360 = vmatpush3.bf16.msra.mxu1 %v361_v0  ;;  %v368_v7 = vld [vmem:[%s485_s0 + $0x18] sm:$0xff]  }
   0x4   :  { %343 = vmatprep.mubr.msk.bf16.mxu0 %vm76_vm0, %v362_v1  ;;  %351 = vmatprep.mubr.msk.bf16.mxu1 %vm76_vm0, %v363_v2  ;;  %v369_v8 = vld [vmem:[%s485_s0 + $0x38] sm:$0xff]  }
   0x6   :  { %344 = vmatmul.mubr.msk.bf16.vlgmr.msra.gmra.mrb[0].mxu0 %vm76_vm0, %v364_v3  ;;  %352 = vmatmul.mubr.msk.bf16.vlgmr.msra.gmra.mrb[0].mxu1 %vm76_vm0, %v365_v4 }
   0x7   :  { %347 = vmatprep.mubr.msk.bf16.mxu0 %vm76_vm0, %v366_v5  ;;  %355 = vmatprep.mubr.msk.bf16.mxu1 %vm76_vm0, %v367_v6 }
   0xe   :  { %348 = vmatmul.mubr.msk.bf16.gmra.mrb[4].mxu0 %vm76_vm0, %v368_v7  ;;  %356 = vmatmul.mubr.msk.bf16.gmra.mrb[4].mxu1 %vm76_vm0, %v369_v8 }
  0xd9   :  { %v345_v9 = vpop.f32.mrb[0].mxu0  ;;  %v353_v10 = vpop.f32.mrb[0].mxu1 }
  0xda   :  { %v318_v11 = vpack.c.bf16 %v345_v9, %v345_v9  ;;  %v326_v12 = vpack.c.bf16 %v353_v10, %v353_v10  ;;  %v135_v13 = vpop.f32.mrb[1].mxu0  ;;  %v167_v14 = vpop.f32.mrb[1].mxu1 }
  0xdb   :  { %v316_v15 = vpack.c.bf16 %v135_v13, %v135_v13  ;;  %v324_v16 = vpack.c.bf16 %v167_v14, %v167_v14  ;;  %v346_v17 = vpop.f32.mrb[2].mxu0  ;;  %v354_v18 = vpop.f32.mrb[2].mxu1 }
  0xdc   :  { %265 = vst.msk [vmem:[%s486_s2 + $0x8] sm:$0xf] %vm262_vm1, %v318_v11  ;;  %273 = vst.msk [vmem:[%s486_s2 + $0x28] sm:$0xf] %vm262_vm1, %v326_v12  ;;  %v319_v19 = vpack.c.bf16 %v346_v17, %v346_v17  ;;  %v327_v20 = vpack.c.bf16 %v354_v18, %v354_v18  ;;  %v138_v21 = vpop.f32.mrb[3].mxu0  ;;  %v170_v22 = vpop.f32.mrb[3].mxu1 }
  0xdd   :  { %263 = vst.msk [vmem:[%s486_s2] sm:$0xf] %vm262_vm1, %v316_v15  ;;  %271 = vst.msk [vmem:[%s486_s2 + $0x20] sm:$0xf] %vm262_vm1, %v324_v16  ;;  %v317_v23 = vpack.c.bf16 %v138_v21, %v138_v21  ;;  %v325_v24 = vpack.c.bf16 %v170_v22, %v170_v22 }
  0xde   :  { %266 = vst.msk [vmem:[%s486_s2 + $0xc] sm:$0xf] %vm262_vm1, %v319_v19  ;;  %274 = vst.msk [vmem:[%s486_s2 + $0x2c] sm:$0xf] %vm262_vm1, %v327_v20 }
  0xdf   :  { %264 = vst.msk [vmem:[%s486_s2 + $0x4] sm:$0xf] %vm262_vm1, %v317_v23  ;;  %272 = vst.msk [vmem:[%s486_s2 + $0x24] sm:$0xf] %vm262_vm1, %v325_v24 }
  0xe1   :  { %v349_v25 = vpop.f32.mrb[4].mxu0  ;;  %v357_v26 = vpop.f32.mrb[4].mxu1 }
  0xe2   :  { %v322_v27 = vpack.c.bf16 %v349_v25, %v349_v25  ;;  %v330_v28 = vpack.c.bf16 %v357_v26, %v357_v26  ;;  %v151_v29 = vpop.f32.mrb[5].mxu0  ;;  %v183_v30 = vpop.f32.mrb[5].mxu1 }
  0xe3   :  { %v320_v31 = vpack.c.bf16 %v151_v29, %v151_v29  ;;  %v328_v32 = vpack.c.bf16 %v183_v30, %v183_v30  ;;  %v350_v33 = vpop.f32.mrb[6].mxu0  ;;  %v358_v34 = vpop.f32.mrb[6].mxu1 }
  0xe4   :  { %269 = vst.msk [vmem:[%s486_s2 + $0x18] sm:$0xf] %vm262_vm1, %v322_v27  ;;  %277 = vst.msk [vmem:[%s486_s2 + $0x38] sm:$0xf] %vm262_vm1, %v330_v28  ;;  %v323_v35 = vpack.c.bf16 %v350_v33, %v350_v33  ;;  %v331_v36 = vpack.c.bf16 %v358_v34, %v358_v34  ;;  %v154_v37 = vpop.f32.mrb[7].mxu0  ;;  %v186_v38 = vpop.f32.mrb[7].mxu1 }
  0xe5   :  { %267 = vst.msk [vmem:[%s486_s2 + $0x10] sm:$0xf] %vm262_vm1, %v320_v31  ;;  %275 = vst.msk [vmem:[%s486_s2 + $0x30] sm:$0xf] %vm262_vm1, %v328_v32  ;;  %v321_v39 = vpack.c.bf16 %v154_v37, %v154_v37  ;;  %v329_v40 = vpack.c.bf16 %v186_v38, %v186_v38 }
  0xe6   :  { %270 = vst.msk [vmem:[%s486_s2 + $0x1c] sm:$0xf] %vm262_vm1, %v323_v35  ;;  %278 = vst.msk [vmem:[%s486_s2 + $0x3c] sm:$0xf] %vm262_vm1, %v331_v36 }
  0xe7   :  { %268 = vst.msk [vmem:[%s486_s2 + $0x14] sm:$0xf] %vm262_vm1, %v321_v39  ;;  %276 = vst.msk [vmem:[%s486_s2 + $0x34] sm:$0xf] %vm262_vm1, %v329_v40 }

</bundles_post_ra>
